<compile_context>
chip_gen: v5e
topology: v5e:2x2
jax: 0.10.0
libtpu: 0.0.40
codegen_flags: <defaults>
</compile_context>

<pallas_src>
import functools
import math

import jax
import jax.numpy as jnp
from jax import lax
from jax.experimental import pallas as pl
from jax.experimental.pallas import tpu as pltpu


def _focal_kernel(x_ref, t_ref, o_ref, *, alpha, gamma, eps, valid_n):
    # x_ref: (1, C, TN) logits, t_ref: (1, 1, TN) int32, o_ref: (1, 1, TN) f32.
    x = x_ref[0].astype(jnp.float32)                       # (C, TN)
    tgt = t_ref[0]                                         # (1, TN) int32
    tn = x.shape[-1]

    # Numerically-stable softmax numerator / denominator over the class
    # (sublane) axis; keep only the target-class numerator.
    x_max = jnp.max(x, axis=0, keepdims=True)              # (1, TN)
    ex = jnp.exp(x - x_max)                                # (C, TN) EUP
    denom = jnp.sum(ex, axis=0, keepdims=True)             # (1, TN)
    class_ids = lax.broadcasted_iota(jnp.int32, ex.shape, 0)
    ex_t = jnp.sum(jnp.where(class_ids == tgt, ex, 0.0),
                   axis=0, keepdims=True)                  # (1, TN)

    # Remaining math on the (1, TN) row only: 1 divide, 1 pow, 1 log / pixel.
    p_t = ex_t / denom + eps                               # softmax[target]+eps
    one_minus = 1.0 - p_t
    if float(gamma) == int(gamma):
        weight = lax.integer_pow(one_minus, int(gamma))    # VPU multiplies
    else:
        # NOTE: for fractional gamma, (1 - (p+eps)) can be slightly negative
        # when a class saturates -> NaN; this matches the PyTorch reference.
        weight = one_minus ** gamma
    loss = (-alpha) * weight * jnp.log(p_t)                # (1, TN)

    # Mask lanes past the true pixel count (ragged tail block).
    lane = lax.broadcasted_iota(jnp.int32, (1, tn), 1)
    valid = (pl.program_id(1) * tn + lane) < valid_n
    o_ref[0] = jnp.where(valid, loss, 0.0).astype(o_ref.dtype)


def focal_loss_pallas(inp, target, alpha, gamma=2.0, reduction="none",
                      eps=1e-6, block_n=65536):
    """Matches torch `focal_loss(input, target, alpha, gamma, reduction, eps)`.

    inp: (B, C, *spatial) float logits; target: (B, *spatial) integer labels.
    """
    if inp.ndim < 2:
        raise ValueError(f"Invalid input shape, expected BxCx*. Got {inp.shape}")
    B, C = inp.shape[0], inp.shape[1]
    spatial = inp.shape[2:]
    if target.shape != (B,) + spatial:
        raise ValueError(
            f"Expected target size {(B,) + spatial}, got {target.shape}")

    S = math.prod(spatial) if spatial else 1

    # Native layout: reshape only (no transpose, no pad -> no extra HBM pass).
    x_bcs = inp.reshape(B, C, S)
    t_b1s = target.astype(jnp.int32).reshape(B, 1, S)

    # Lane-tile size: multiple of 128, >=128, no larger than the rounded-up
    # pixel count, capped at 128K lanes.  VMEM/step ~ 2 bufs * 3 rows *
    # 8 sublanes * 4 B * block_n + compiler temporaries (~26 MiB at 64K).
    block_n = max(128, (int(block_n) // 128) * 128)
    block_n = min(block_n, pl.cdiv(S, 128) * 128, 131072)
    grid = (B, pl.cdiv(S, block_n))

    kernel = functools.partial(
        _focal_kernel, alpha=float(alpha), gamma=float(gamma),
        eps=float(eps), valid_n=S)

    loss_b1s = pl.pallas_call(
        kernel,
        out_shape=jax.ShapeDtypeStruct((B, 1, S), jnp.float32),
        grid=grid,
        in_specs=[
            pl.BlockSpec((1, C, block_n), lambda b, i: (b, 0, i)),
            pl.BlockSpec((1, 1, block_n), lambda b, i: (b, 0, i)),
        ],
        out_specs=pl.BlockSpec((1, 1, block_n), lambda b, i: (b, 0, i)),
        compiler_params=pltpu.CompilerParams(
            dimension_semantics=("parallel", "parallel"),
            vmem_limit_bytes=64 * 1024 * 1024),
    )(x_bcs, t_b1s)

    loss = loss_b1s.reshape((B,) + spatial)
    if reduction == "none":
        return loss
    elif reduction == "mean":
        return jnp.mean(loss)
    elif reduction == "sum":
        return jnp.sum(loss)
    else:
        raise NotImplementedError(f"Invalid reduction mode: {reduction}")


class FocalLoss:
    """Mirror of the PyTorch nn.Module wrapper (forward only)."""

    def __init__(self, alpha, gamma=2.0, reduction="none"):
        self.alpha = alpha
        self.gamma = gamma
        self.reduction = reduction
        self.eps = 1e-6

    def __call__(self, inp, target):
        return focal_loss_pallas(inp, target, self.alpha, self.gamma,
                                 self.reduction, self.eps)


def _focal_loss_ref(inp, target, alpha, gamma=2.0, reduction="none", eps=1e-6):
    """Pure-JAX reference mirroring the PyTorch focal_loss."""
    soft = jax.nn.softmax(inp.astype(jnp.float32), axis=1) + eps
    C = inp.shape[1]
    oh = jax.nn.one_hot(target, C, axis=1, dtype=jnp.float32)
    one_minus = 1.0 - soft
    if float(gamma) == int(gamma):
        weight = lax.integer_pow(one_minus, int(gamma))
    else:
        weight = one_minus ** gamma
    focal = -alpha * weight * jnp.log(soft)
    loss_tmp = jnp.sum(oh * focal, axis=1)
    if reduction == "none":
        return loss_tmp
    elif reduction == "mean":
        return jnp.mean(loss_tmp)
    elif reduction == "sum":
        return jnp.sum(loss_tmp)
    raise NotImplementedError(reduction)


if __name__ == "__main__":
    alpha, gamma = 0.5, 2.0
    key = jax.random.PRNGKey(0)
    k1, k2, k3, k4 = jax.random.split(key, 4)

    # Case 1: canonical shape (B=2, C=4, 16x16 -> S=256 lanes per batch row).
    B, C, H, W = 2, 4, 16, 16
    inp = jax.random.normal(k1, (B, C, H, W), dtype=jnp.float32)
    tgt = jax.random.randint(k2, (B, H, W), 0, C, dtype=jnp.int32)

    mod = FocalLoss(alpha, gamma, reduction="none")
    out = jax.block_until_ready(mod(inp, tgt))
    ref = _focal_loss_ref(inp, tgt, alpha, gamma, "none", 1e-6)
    assert out.shape == (B, H, W), out.shape
    assert jnp.allclose(out, ref, rtol=1e-5, atol=1e-6), (
        float(jnp.max(jnp.abs(out - ref))))

    # Case 2: ragged lane tail (S = 15*20 = 300, block_n=128 -> 3 lane blocks,
    # last one partial) exercising the in-kernel tail mask, plus 'mean'.
    H2, W2 = 15, 20
    inp2 = jax.random.normal(k3, (B, C, H2, W2), dtype=jnp.float32)
    tgt2 = jax.random.randint(k4, (B, H2, W2), 0, C, dtype=jnp.int32)

    out2 = jax.block_until_ready(
        focal_loss_pallas(inp2, tgt2, alpha, gamma, reduction="none",
                          eps=1e-6, block_n=128))
    ref2 = _focal_loss_ref(inp2, tgt2, alpha, gamma, "none", 1e-6)
    assert out2.shape == (B, H2, W2), out2.shape
    assert jnp.allclose(out2, ref2, rtol=1e-5, atol=1e-6), (
        float(jnp.max(jnp.abs(out2 - ref2))))

    out_mean = jax.block_until_ready(
        focal_loss_pallas(inp2, tgt2, alpha, gamma, reduction="mean",
                          eps=1e-6, block_n=128))
    ref_mean = _focal_loss_ref(inp2, tgt2, alpha, gamma, "mean", 1e-6)
    assert jnp.allclose(out_mean, ref_mean, rtol=1e-5, atol=1e-6)

    print("KERNEL_OK")
</pallas_src>

<mosaic_0001>
module attributes {stable_mosaic.version = 11 : i64} {
  func.func @_focal_kernel(%arg0: i32, %arg1: i32, %arg2: memref<1x4x256xf32, #tpu.memory_space<vmem>>, %arg3: memref<1x1x256xi32, #tpu.memory_space<vmem>>, %arg4: memref<1x1x256xf32, #tpu.memory_space<vmem>>) attributes {dimension_semantics = [#tpu.dimension_semantics<parallel>, #tpu.dimension_semantics<parallel>], iteration_bounds = array<i64: 2, 1>, scalar_prefetch = 0 : i64, scratch_operands = 0 : i64, tpu.core_type = #tpu.core_type<tc>, window_params = [{transform_indices = @transform_0, window_bounds = array<i64: 1, 4, 256>}, {transform_indices = @transform_1, window_bounds = array<i64: 1, 1, 256>}, {transform_indices = @transform_2, window_bounds = array<i64: 1, 1, 256>}]} {
    %c0 = arith.constant 0 : index
    %c0_0 = arith.constant 0 : index
    %c0_1 = arith.constant 0 : index
    %0 = vector.load %arg2[%c0, %c0_0, %c0_1] : memref<1x4x256xf32, #tpu.memory_space<vmem>>, vector<1x4x256xf32>
    %1 = vector.shape_cast %0 : vector<1x4x256xf32> to vector<4x256xf32>
    %c0_2 = arith.constant 0 : index
    %c0_3 = arith.constant 0 : index
    %c0_4 = arith.constant 0 : index
    %2 = vector.load %arg3[%c0_2, %c0_3, %c0_4] : memref<1x1x256xi32, #tpu.memory_space<vmem>>, vector<1x1x256xi32>
    %3 = vector.shape_cast %2 : vector<1x1x256xi32> to vector<1x256xi32>
    %cst = arith.constant dense<0xFF800000> : vector<256xf32>
    %4 = vector.multi_reduction <maximumf>, %1, %cst [0] : vector<4x256xf32> to vector<256xf32>
    %5 = vector.shape_cast %4 : vector<256xf32> to vector<1x256xf32>
    %6 = vector.broadcast %5 : vector<1x256xf32> to vector<4x256xf32>
    %7 = arith.subf %1, %6 : vector<4x256xf32>
    %8 = math.exp %7 : vector<4x256xf32>
    %cst_5 = arith.constant dense<0.000000e+00> : vector<256xf32>
    %9 = vector.multi_reduction <add>, %8, %cst_5 [0] : vector<4x256xf32> to vector<256xf32>
    %10 = vector.shape_cast %9 : vector<256xf32> to vector<1x256xf32>
    %11 = tpu.iota {dimensions = array<i32: 0>} : vector<4x256xi32>
    %12 = vector.broadcast %3 : vector<1x256xi32> to vector<4x256xi32>
    %13 = arith.cmpi eq, %11, %12 : vector<4x256xi32>
    %cst_6 = arith.constant 0.000000e+00 : f32
    %14 = vector.broadcast %cst_6 : f32 to vector<4x256xf32>
    %15 = arith.select %13, %8, %14 : vector<4x256xi1>, vector<4x256xf32>
    %cst_7 = arith.constant dense<0.000000e+00> : vector<256xf32>
    %16 = vector.multi_reduction <add>, %15, %cst_7 [0] : vector<4x256xf32> to vector<256xf32>
    %17 = vector.shape_cast %16 : vector<256xf32> to vector<1x256xf32>
    %18 = arith.divf %17, %10 : vector<1x256xf32>
    %cst_8 = arith.constant 9.99999997E-7 : f32
    %19 = vector.broadcast %cst_8 : f32 to vector<1x256xf32>
    %20 = arith.addf %18, %19 : vector<1x256xf32>
    %cst_9 = arith.constant 1.000000e+00 : f32
    %21 = vector.broadcast %cst_9 : f32 to vector<1x256xf32>
    %22 = arith.subf %21, %20 : vector<1x256xf32>
    %23 = arith.mulf %22, %22 : vector<1x256xf32>
    %cst_10 = arith.constant -5.000000e-01 : f32
    %24 = vector.broadcast %cst_10 : f32 to vector<1x256xf32>
    %25 = arith.mulf %24, %23 : vector<1x256xf32>
    %26 = math.log %20 : vector<1x256xf32>
    %27 = arith.mulf %25, %26 : vector<1x256xf32>
    %28 = tpu.iota {dimensions = array<i32: 1>} : vector<1x256xi32>
    %c256_i32 = arith.constant 256 : i32
    %29 = arith.muli %arg1, %c256_i32 : i32
    %30 = vector.broadcast %29 : i32 to vector<1x256xi32>
    %31 = arith.addi %30, %28 : vector<1x256xi32>
    %c256_i32_11 = arith.constant 256 : i32
    %32 = vector.broadcast %c256_i32_11 : i32 to vector<1x256xi32>
    %33 = arith.cmpi slt, %31, %32 : vector<1x256xi32>
    %cst_12 = arith.constant 0.000000e+00 : f32
    %34 = vector.broadcast %cst_12 : f32 to vector<1x256xf32>
    %35 = arith.select %33, %27, %34 : vector<1x256xi1>, vector<1x256xf32>
    %c0_13 = arith.constant 0 : index
    %c0_14 = arith.constant 0 : index
    %c0_15 = arith.constant 0 : index
    %36 = vector.load %arg4[%c0_13, %c0_14, %c0_15] : memref<1x1x256xf32, #tpu.memory_space<vmem>>, vector<1x1x256xf32>
    %37 = vector.shape_cast %36 : vector<1x1x256xf32> to vector<1x256xf32>
    %38 = vector.shape_cast %35 : vector<1x256xf32> to vector<1x1x256xf32>
    tpu.vector_store %arg4[%c0_13, %c0_14, %c0_15], %38 {strides = array<i32>} : memref<1x1x256xf32, #tpu.memory_space<vmem>>, vector<1x1x256xf32>,
    return
  }
  func.func @transform_0(%arg0: i32, %arg1: i32) -> (i32, i32, i32) {
    %c0_i32 = arith.constant 0 : i32
    %c0_i32_0 = arith.constant 0 : i32
    return %arg0, %c0_i32, %arg1 : i32, i32, i32
  }
  func.func @transform_1(%arg0: i32, %arg1: i32) -> (i32, i32, i32) {
    %c0_i32 = arith.constant 0 : i32
    %c0_i32_0 = arith.constant 0 : i32
    return %arg0, %c0_i32, %arg1 : i32, i32, i32
  }
  func.func @transform_2(%arg0: i32, %arg1: i32) -> (i32, i32, i32) {
    %c0_i32 = arith.constant 0 : i32
    %c0_i32_0 = arith.constant 0 : i32
    return %arg0, %c0_i32, %arg1 : i32, i32, i32
  }
}

</mosaic_0001>

<bundles_post_ra>
// kernel: tpu_custom_call.1
= control target key start
LH: loop header
LB: loop body
LE: loop exit
PB: predicated region body
PF: predicated region fallthrough
CT: control target
= control target key end

     0   :  { %7 = vsyncpa [#allocation3], 0  ;;  %s905_s0 = inlined_call_operand.hbm [shape: f32[2,4,256], index: 0, kind: input, shape index: {}]   ;;  %s906_s1 = inlined_call_operand.hbm [shape: s32[2,1,256], index: 1, kind: input, shape index: {}]   ;;  %s907_s2 = inlined_call_operand.hbm [shape: f32[2,1,256], index: 2, kind: output, shape index: {}]  }
   0x1   :  { %9 = vsyncpa [#allocation3 + $0x1], 0 }
   0x2   :  { %10 = vsyncpa [#allocation6], 0 }
   0x3   :  { %12 = vsyncpa [#allocation6 + $0x1], 0 }
   0x4   :  { %13 = vsyncpa [#allocation4], 0 }
   0x5   :  { %15 = vsyncpa [#allocation4 + $0x1], 0  ;;  %s754_s9 = smov 0   ;;  %s756_s10 = smov 0  }
   0x6   :  { %s758_s11 = smov 0   ;;  %s760_s12 = smov 0  }
   0x7   :  { %s762_s13 = smov 0   ;;  %s764_s14 = smov 0  }
   0x8 LB: > { %s496_s15 = sadd.s32 4294967295, %s737_s14   ;;  %s497_s16 = sadd.s32 4294967294, %s737_s14   ;;  %s737_s14 = sphi %s764_s14, %s21_s14   ;;  %s733_s13 = sphi %s762_s13, %s917_s13   ;;  %s729_s12 = sphi %s760_s12, %s916_s12   ;;  %s725_s11 = sphi %s758_s11, %s915_s11   ;;  %s721_s10 = sphi %s756_s10, %s914_s10   ;;  %s717_s9 = sphi %s754_s9, %s913_s9  }
   0x9   : > { %s33_s17 = sadd.s32 1, %s733_s13  ;;  %s42_s18 = sadd.s32 1, %s725_s11 }
   0xa   : > { %p35_p0 = scmp.ge.s32.totalorder %s33_s17, 2  ;;  %p49_p1 = scmp.ne.s32.totalorder %s725_s11, %s721_s10 }
   0xb   : > { %p50_p2 = scmp.eq.s32.totalorder %s737_s14, 0  ;;  %p55_p3 = scmp.ne.s32.totalorder %s721_s10, %s717_s9 }
   0xc   : > { %s919_s17 = smov (%p35_p0, %s33_s17), 0  ;;  %p56_p5 = scmp.eq.s32.totalorder %s496_s15, 0 }
   0xd   : > { %p795_p4 = por %p50_p2, %p49_p1  ;;  %s37_s20 = ssub.s32 %s733_s13, %s919_s17 }
   0xe   : > { %p109_p6 = scmp.eq.s32.totalorder %s496_s15, 1  ;;  %p40_p7 = scmp.eq.s32.totalorder %s37_s20, 0 }
   0xf   : > { %p801_p8 = por %p56_p5, %p55_p3  ;;  %p115_p10 = scmp.eq.s32.totalorder %s497_s16, 1 }
  0x10   : > { %p805_p9 = por %p109_p6, %p49_p1  ;;  %p499_p12 = scmp.ge.s32.totalorder %s737_s14, 2 }
  0x11   : > { %s810_s23 = scalar_select %p40_p7, %s725_s11, %s42_s18  }
  0x12   : > { %p812_p11 = por %p115_p10, %p55_p3  ;;  %p531_p13 = scmp.lt.s32.totalorder %s737_s14, 2 }
  0x13   : > { %s135_s25 = sand.u32 1, %s725_s11   ;;  %s513_s27 = sshll.u32 %s733_s13, 3 }
  0x14   : > { %s500_s26 = sshll.u32 %s135_s25, 3  ;;  %s146_s30 = scalar_lea.hbm %s905_s0, %s513_s27 }
  0x15   : > { %s139_s3 = scalar_lea.vmem [#allocation2], %s500_s26  ;;  %s148_s5 = sshll.u32 %s146_s30, 4  ;;  %s149_s5 = int_to_ptr.hbm [resolvable:$true] %s148_s5 }
  0x16   : > { %s150_s4 = sshll.u32 %s139_s3, 4  ;;  %p825_p0 = pnand %p531_p13, %p795_p4  ;;  %s151_s4 = int_to_ptr.vmem [resolvable:$true] %s150_s4 }
  0x17   : > { %p505_p1 = scmp.ge.s32.totalorder %s737_s14, 1  ;;  %p176_p2 = scmp.lt.s32.totalorder %s737_s14, 3 }
  0x18   : > { %s136_s7 = scalar_lea.sflag [#allocation3], %s135_s25  ;;  %s503_s8 = sshll.u32 %s135_s25, 1 }
  0x19   : > { %523 = dma.hbm_to_vmem [thread:$0]  (!%p825_p0), %s149_s5, 128, %s151_s4, %s136_s7  }
  0x1a   : > { %p177_p3 = pnand %p505_p1, %p176_p2  ;;  %s504_s15 = sshll.u32 %s733_s13, 1 }
  0x1b   : > { %s167_s20 = scalar_lea.hbm %s906_s1, %s504_s15  ;;  %s161_s26 = scalar_lea.vmem [#allocation5], %s503_s8 }
  0x1c   : > { %s171_s19 = sshll.u32 %s161_s26, 4  ;;  %s169_s27 = sshll.u32 %s167_s20, 4  ;;  %s172_s19 = int_to_ptr.vmem [resolvable:$true] %s171_s19  ;;  %s170_s27 = int_to_ptr.hbm [resolvable:$true] %s169_s27 }
  0x1d   : > { %s158_s28 = scalar_lea.sflag [#allocation6], %s135_s25  ;;  %180 = sbr.rel (%p177_p3) target bundleno = 134 (0x86), region = 28 }
  0x1e   : > { %526 = dma.hbm_to_vmem [thread:$0]  (!%p825_p0), %s170_s27, 32, %s172_s19, %s158_s28  }
  0x1f   : > { %s840_s29 = sand.u32 (!%p177_p3), 1, %s721_s10  }
  0x20   : > { %s506_s30 = sshll.u32 (!%p177_p3), %s840_s29, 3  ;;  %s183_s3 = scalar_lea.sflag (!%p177_p3), [#allocation3], %s840_s29 }
  0x21   : > { %s186_s4 = scalar_lea.vmem (!%p177_p3), [#allocation2], %s506_s30 }
  0x22   : > { %704 = dma.done.wait (%p801_p8), %s183_s3, 128  }
  0x23   : > { %706 = vsyncadd (%p801_p8), %s183_s3, 4294967168  ;;  %s507_s25 = sshll.u32 %s840_s29, 1  ;;  %s193_s5 = scalar_lea.sflag [#allocation6], %s840_s29 }
  0x24   : > { %s196_s6 = scalar_lea.vmem [#allocation5], %s507_s25 }
  0x25   : > { %708 = dma.done.wait (%p801_p8), %s193_s5, 32  }
  0x26   : > { %710 = vsyncadd (%p801_p8), %s193_s5, 4294967264  ;;  %v226_v0 = vld [vmem:[%s186_s4] sm:$0xff]  ;;  %vm234_vm0 = vcmask 1043456   ;;  %v277_v22 = vlaneseq  ;;  %v227_v23 = vld [vmem:[%s196_s6] sm:$0x3]  ;;  %s510_s21 = sshll.u32 %s729_s12, 1 }
  0x27   : > { %229 = vst [vmem:[#allocation1] ss:$2 sm:$0xff] %v226_v0  ;;  %v279_v31 = vperm.slane %v227_v23, 0  ;;  %v280_v32 = vperm.slane %v227_v23, 1  ;;  %s383_s15 = scalar_lea.hbm %s907_s2, %s510_s21  ;;  %s222_s16 = scalar_lea.vmem [#allocation7], %s507_s25  ;;  %vm362_vm11 = vcmask 1040384  }
  0x28   : > { %v278_v28 = vshrl.u32 %v277_v22, 7  ;;  %s385_s18 = sshll.u32 %s222_s16, 4  ;;  %s387_s20 = sshll.u32 %s383_s15, 4  ;;  %vm367_vm12 = vcmp.lt.s32.totalorder %v277_v22, 256  ;;  %s386_s18 = int_to_ptr.vmem [resolvable:$true] %s385_s18  ;;  %s388_s20 = int_to_ptr.hbm [resolvable:$true] %s387_s20 }
  0x29   : > { %s371_s12 = scalar_lea.sflag [#allocation4], %s840_s29  ;;  %s665_s26 = sshra.s32 %s388_s20, 4  ;;  %s666_s26 = int_to_ptr.hbm [resolvable:$true] %s665_s26 }
  0x2a   : > { %vm281_vm1 = vcmp.eq.s32.totalorder %v278_v28, %v279_v31  ;;  %vm282_vm2 = vcmp.eq.s32.totalorder %v278_v28, %v280_v32  ;;  %s667_s19 = scalar_lea.hbm %s666_s26, 2  ;;  %s671_s30 = scalar_lea.hbm %s907_s2, 4 }
  0x2b   : > { %p668_p4 = scmp.ne.s32.totalorder %s666_s26, %s667_s19  ;;  %p672_p7 = scmp.lt.s32.totalorder %s666_s26, %s907_s2 }
  0x2c   : > { %p673_p8 = scmp.lt.s32.totalorder %s671_s30, %s667_s19 }
  0x2d   : > { %p669_p5 = pnand %p668_p4, %p805_p9 }
  0x2e   : > { %v230_v1 = vld.sshfl [vmem:[#allocation1] sm:$0xff pattern:$0x75316420]  ;;  %v231_v2 = vld.sshfl [vmem:[#allocation1 + $0x8] sm:$0xff pattern:$0x75316420]  ;;  %p674_p10 = por %p673_p8, %p672_p7 }
  0x2f   : > { %v235_v3 = vsel %vm234_vm0, %v230_v1, -inf  ;;  %v242_v4 = vsel %vm234_vm0, %v231_v2, -inf  ;;  %p670_p6 = pneg %p669_p5 }
  0x30   : > { %v236_v5 = vrot.slane %v235_v3, 4  ;;  %v243_v6 = vrot.slane %v242_v4, 4 }
  0x31   : > { %p675_p13 = pnand %p674_p10, %p670_p6 }
  0x32   : > { %v237_v7 = vmax.f32 %v235_v3, %v236_v5  ;;  %v244_v8 = vmax.f32 %v242_v4, %v243_v6 }
  0x34   : > { %v238_v9 = vrot.slane %v237_v7, 2  ;;  %v245_v10 = vrot.slane %v244_v8, 2 }
  0x36   : > { %v239_v11 = vmax.f32 %v237_v7, %v238_v9  ;;  %v246_v12 = vmax.f32 %v244_v8, %v245_v10 }
  0x38   : > { %v240_v13 = vrot.slane %v239_v11, 1  ;;  %v247_v14 = vrot.slane %v246_v12, 1 }
  0x3a   : > { %v248_v15 = vmax.f32 %v246_v12, %v247_v14  ;;  %v241_v16 = vmax.f32 %v239_v11, %v240_v13 }
  0x3c   : > { %v251_v17 = vrot.slane %v248_v15, 4 }
  0x3e   : > { %v252_v18 = vsel %vm234_vm0, %v241_v16, %v251_v17 }
  0x3f   : > { %v254_v19 = vsub.f32 %v226_v0, %v252_v18 }
  0x41   : > { %v255_v20 = vmul.f32 1.442695, %v254_v19 }
  0x43   : > { %581 = vpow2.f32 %v255_v20 }
  0x49   : > { %v582_v21 = vpop.eup %581 }
  0x4a   : > { %258 = vst [vmem:[#allocation1] ss:$2 sm:$0xff] %v582_v21 }
  0x51   : > { %v259_v24 = vld.sshfl [vmem:[#allocation1] sm:$0xff pattern:$0x75316420]  ;;  %v260_v25 = vld.sshfl [vmem:[#allocation1 + $0x8] sm:$0xff pattern:$0x75316420] }
  0x52   : > { %v263_v26 = vsel %vm234_vm0, %v259_v24, 0.0  ;;  %v270_v27 = vsel %vm234_vm0, %v260_v25, 0.0  ;;  %283 = vst [vmem:[#allocation1] ss:$2 sm:$0xff] %v582_v21 }
  0x53   : > { %v264_v29 = vrot.slane %v263_v26, 4  ;;  %v271_v30 = vrot.slane %v270_v27, 4 }
  0x55   : > { %v265_v33 = vadd.f32 %v264_v29, %v263_v26  ;;  %v272_v34 = vadd.f32 %v271_v30, %v270_v27 }
  0x57   : > { %v266_v35 = vrot.slane %v265_v33, 2  ;;  %v273_v36 = vrot.slane %v272_v34, 2 }
  0x59   : > { %v267_v37 = vadd.f32 %v266_v35, %v265_v33  ;;  %v274_v38 = vadd.f32 %v273_v36, %v272_v34  ;;  %v284_v39 = vld.sshfl [vmem:[#allocation1] sm:$0xff pattern:$0x75316420]  ;;  %v285_v40 = vld.sshfl [vmem:[#allocation1 + $0x8] sm:$0xff pattern:$0x75316420] }
  0x5a   : > { %v288_v41 = vsel %vm281_vm1, %v284_v39, 0.0  ;;  %v289_v42 = vsel %vm282_vm2, %v285_v40, 0.0 }
  0x5b   : > { %v268_v43 = vrot.slane %v267_v37, 1  ;;  %v275_v44 = vrot.slane %v274_v38, 1  ;;  %v290_v45 = vsel %vm234_vm0, %v288_v41, 0.0  ;;  %v297_v46 = vsel %vm234_vm0, %v289_v42, 0.0 }
  0x5c   : > { %v291_v47 = vrot.slane %v290_v45, 4  ;;  %v298_v48 = vrot.slane %v297_v46, 4 }
  0x5d   : > { %v269_v49 = vadd.f32 %v268_v43, %v267_v37  ;;  %v276_v50 = vadd.f32 %v275_v44, %v274_v38 }
  0x5e   : > { %v292_v51 = vadd.f32 %v291_v47, %v290_v45  ;;  %v299_v52 = vadd.f32 %v298_v48, %v297_v46 }
  0x5f   : > { %583 = vrcp.f32 %v269_v49  ;;  %v313_v62 = vand.u32 2147483647, %v269_v49  ;;  %v315_v63 = vand.u32 2147483648, %v269_v49  ;;  %v330_v3 = vand.u32 2147483648, %v276_v50 }
  0x60   : > { %585 = vrcp.f32 %v276_v50  ;;  %v293_v53 = vrot.slane %v292_v51, 2  ;;  %v300_v54 = vrot.slane %v299_v52, 2  ;;  %v328_v6 = vand.u32 2147483647, %v276_v50 }
  0x61   : > { %vm309_vm5 = vweird.f32 %v269_v49  ;;  %v316_v8 = vor.u32 1.1754944e-38, %v315_v63  ;;  %vm324_vm7 = vweird.f32 %v276_v50  ;;  %vm314_vm8 = vcmp.eq.f32.partialorder %v313_v62, 8.507059e+37 }
  0x62   : > { %v294_v57 = vadd.f32 %v293_v53, %v292_v51  ;;  %v301_v59 = vadd.f32 %v300_v54, %v299_v52  ;;  %v331_v12 = vor.u32 1.1754944e-38, %v330_v3  ;;  %vm329_vm10 = vcmp.eq.f32.partialorder %v328_v6, 8.507059e+37 }
  0x64   : > { %v295_v1 = vrot.slane %v294_v57, 1  ;;  %v302_v4 = vrot.slane %v301_v59, 1 }
  0x65   : > { %v584_v55 = vpop.eup %583 }
  0x66   : > { %v586_v56 = vpop.eup %585  ;;  %v305_v58 = vmul.f32 %v584_v55, %v269_v49  ;;  %vm310_vm3 = vweird.f32 %v584_v55  ;;  %v296_v10 = vadd.f32 %v295_v1, %v294_v57  ;;  %v303_v13 = vadd.f32 %v302_v4, %v301_v59 }
  0x67   : > { %v320_v60 = vmul.f32 %v586_v56, %v276_v50  ;;  %vm325_vm4 = vweird.f32 %v586_v56  ;;  %vm311_vm6 = vmor %vm309_vm5, %vm310_vm3 }
  0x68   : > { %v306_v61 = vsub.f32 1.0, %v305_v58  ;;  %vm326_vm9 = vmor %vm324_vm7, %vm325_vm4 }
  0x69   : > { %v321_v0 = vsub.f32 1.0, %v320_v60 }
  0x6a   : > { %v307_v2 = vmul.f32 %v584_v55, %v306_v61 }
  0x6b   : > { %v322_v5 = vmul.f32 %v586_v56, %v321_v0 }
  0x6c   : > { %v308_v7 = vadd.f32 %v584_v55, %v307_v2 }
  0x6d   : > { %v323_v9 = vadd.f32 %v586_v56, %v322_v5 }
  0x6e   : > { %v312_v11 = vsel %vm311_vm6, %v584_v55, %v308_v7 }
  0x6f   : > { %v317_v14 = vsel %vm314_vm8, %v316_v8, %v312_v11  ;;  %v327_v15 = vsel %vm326_vm9, %v586_v56, %v323_v9 }
  0x70   : > { %v318_v16 = vmul.f32 %v317_v14, %v296_v10  ;;  %v332_v17 = vsel %vm329_vm10, %v331_v12, %v327_v15 }
  0x71   : > { %v333_v18 = vmul.f32 %v332_v17, %v303_v13 }
  0x72   : > { %v334_v19 = vadd.f32 1e-06, %v318_v16 }
  0x73   : > { %v335_v20 = vadd.f32 1e-06, %v333_v18 }
  0x74   : > { %587 = vlog2.f32 %v334_v19  ;;  %v336_v23 = vsub.f32 1.0, %v334_v19 }
  0x75   : > { %v337_v21 = vsub.f32 1.0, %v335_v20  ;;  %589 = vlog2.f32 %v335_v20 }
  0x76   : > { %v338_v26 = vmul.f32 %v336_v23, %v336_v23 }
  0x77   : > { %v339_v24 = vmul.f32 %v337_v21, %v337_v21 }
  0x78   : > { %v340_v31 = vmul.f32 -0.5, %v338_v26 }
  0x79   : > { %v341_v28 = vmul.f32 -0.5, %v339_v24 }
  0x7a   : > { %v588_v25 = vpop.eup %587 }
  0x7b   : > { %v590_v27 = vpop.eup %589  ;;  %v343_v29 = vmul.f32 0.6931472, %v588_v25 }
  0x7c   : > { %v345_v30 = vmul.f32 0.6931472, %v590_v27 }
  0x7d   : > { %v346_v33 = vmul.f32 %v343_v29, %v340_v31 }
  0x7e   : > { %v347_v32 = vmul.f32 %v345_v30, %v341_v28 }
  0x80   : > { %v361_v34 = vrot.slane %v347_v32, 7 }
  0x82   : > { %v363_v35 = vsel %vm362_vm11, %v346_v33, %v361_v34 }
  0x83   : > { %369 = vst.msk [vmem:[%s222_s16] sm:$0x3] %vm367_vm12, %v363_v35 }
  0x84   : > { %678 = shalt.err (!%p675_p13)
}
  0x85   : > { %518 = dma.vmem_to_hbm [thread:$0]  (%p805_p9), %s386_s18, 32, %s388_s20, %s371_s12  }
  0x86 PF: > { %s399_s29 = sand.u32 1, %s717_s9   ;;  %p528_p0 = pnand %p499_p12, %p812_p11 }
  0x87   : > { %s400_s25 = scalar_lea.sflag [#allocation4], %s399_s29 }
  0x88   : > { %p529_p1 = pneg %p528_p0 }
  0x8a   : > { %712 = dma.done.wait (%p529_p1), %s400_s25, 32  }
  0x8b   : > { %714 = vsyncadd (%p529_p1), %s400_s25, 4294967264  ;;  %s21_s14 = sadd.s32 1, %s737_s14   ;;  %s913_s9 = smov %s721_s10 }
  0x8c   : > { %p18_p2 = scmp.ge.s32.totalorder %s21_s14, 4   ;;  %s914_s10 = smov %s725_s11 }
  0x8d   : > { %s915_s11 = smov %s810_s23  ;;  %s916_s12 = smov %s733_s13 }
  0x8e   : > { %s917_s13 = smov %s919_s17  ;;  %20 = sbr.rel (!%p18_p2) target bundleno = 8 (0x8), region = 86 }
  0x93   :  { %406 = vsyncpa [#allocation3], 1 }
  0x94   :  { %408 = vsyncpa [#allocation3 + $0x1], 1 }
  0x95   :  { %409 = vsyncpa [#allocation6], 1 }
  0x96   :  { %411 = vsyncpa [#allocation6 + $0x1], 1 }
  0x97   :  { %412 = vsyncpa [#allocation4], 1 }
  0x98   :  { %414 = vsyncpa [#allocation4 + $0x1], 1 }

</bundles_post_ra>
